<compile_context>
chip_gen: v5e
topology: v5e:2x2
jax: 0.10.0
libtpu: 0.0.40
codegen_flags: <defaults>
</compile_context>

<pallas_src>
import functools

import jax
import jax.numpy as jnp
import numpy as np
from jax import lax
from jax.experimental import pallas as pl
from jax.experimental.pallas import tpu as pltpu


def _pad_lanes(n):
    """Round a lane width up to a multiple of 128 (vreg lane extent)."""
    return ((n + 127) // 128) * 128


def residual_kernel(x_ref, w1_ref, g1_ref, be1_ref,
                    w2_ref, g2_ref, be2_ref, p_ref, *rest,
                    N, H, Cout_lanes, eps, use_1x1conv):
    if use_1x1conv:
        w3_ref, b3_ref, out_ref = rest
    else:
        (out_ref,) = rest

    R = N * H
    # Row-within-image index; image-border rows get zeroed vertical taps
    # (this is the conv's vertical zero padding).
    row = lax.broadcasted_iota(jnp.int32, (R, 1), 0) % H
    not_top = row != 0            # "previous row" tap is valid
    not_bot = row != (H - 1)      # "next row" tap is valid

    def conv3x3(y, w_ref):
        """Fused 3-tap banded conv: one (R, 3K) x (3K, WLout) MXU matmul.

        Vertical taps are sublane rolls (XLU) of the resident f32 activation,
        masked at image boundaries; horizontal padding is baked into the
        banded weight.  Single f32->bf16 cast of the fused slab."""
        up = jnp.where(not_top, pltpu.roll(y, shift=1, axis=0), 0.0)        # row h-1
        down = jnp.where(not_bot, pltpu.roll(y, shift=R - 1, axis=0), 0.0)  # row h+1
        slab = jnp.concatenate([up, y, down], axis=-1).astype(jnp.bfloat16)
        return jnp.dot(slab, w_ref[...], preferred_element_type=jnp.float32)

    def batchnorm(y, g_ref, be_ref):
        """Training-mode BN over (batch, H, W), stats in f32, one pass.

        One (2, WL) x (WL, WL) dot against P = kron(1_WxW, I_Cout)/(N*H*W)
        sums the W lane-groups per channel and broadcasts back to all lanes
        for both the mean and E[x^2] rows at once."""
        sums = jnp.concatenate([jnp.sum(y, axis=0, keepdims=True),
                                jnp.sum(y * y, axis=0, keepdims=True)], axis=0)
        stats = jnp.dot(sums, p_ref[...], preferred_element_type=jnp.float32)
        mean = stats[0:1, :]
        var = jnp.maximum(stats[1:2, :] - mean * mean, 0.0)   # clamp cancellation
        scale = g_ref[...] * lax.rsqrt(var + eps)
        shift = be_ref[...] - mean * scale
        return y * scale + shift

    x = x_ref[...]                                            # (R, PWLI) f32

    # conv1 -> bn1 -> relu   (conv biases dropped: they cancel through batch-stat BN)
    y1 = jnp.maximum(batchnorm(conv3x3(x, w1_ref), g1_ref, be1_ref), 0.0)
    # conv2 -> bn2
    y2 = batchnorm(conv3x3(y1, w2_ref), g2_ref, be2_ref)

    # skip path
    if use_1x1conv:
        skip = jnp.dot(x.astype(jnp.bfloat16), w3_ref[...],
                       preferred_element_type=jnp.float32) + b3_ref[...]
    else:
        skip = x[:, :Cout_lanes]          # requires Cin == Cout (checked in wrapper)

    out_ref[...] = jnp.maximum(y2 + skip, 0.0)


def _band3x3_fused(w, W, lanes_in):
    """PyTorch OIHW (Cout, Cin, 3, 3) -> fused (3*lanes_in, W*Cout) banded weight.

    Input lane layout: w_in*Cin + c (zero-padded to lanes_in); output lane:
    w_out*Cout + o.  Horizontal zero padding is baked in; the 3 vertical taps
    are stacked along K in [row h-1, row h, row h+1] order (matches the
    kernel's fused slab)."""
    Cout, Cin, KH, KW = w.shape
    wi = np.arange(W)[:, None]
    wo = np.arange(W)[None, :]
    sel = np.stack([(wi == wo + dx - 1).astype(np.float32) for dx in range(KW)], 0)
    band = jnp.einsum("xiw,ocyx->yicwo", jnp.asarray(sel), w)   # (KH, W, Cin, W, Cout)
    band = band.reshape(KH, W * Cin, W * Cout)
    if lanes_in > W * Cin:
        band = jnp.pad(band, ((0, 0), (0, lanes_in - W * Cin), (0, 0)))
    return band.reshape(KH * lanes_in, W * Cout)


def _band1x1(w3, W, lanes_in):
    """(Cout, Cin) -> block-diagonal (lanes_in, W*Cout)."""
    Cout, Cin = w3.shape
    band = jnp.einsum("iw,oc->icwo", jnp.eye(W, dtype=w3.dtype), w3)
    band = band.reshape(W * Cin, W * Cout)
    if lanes_in > W * Cin:
        band = jnp.pad(band, ((0, lanes_in - W * Cin), (0, 0)))
    return band


def _tile_c(v, W):
    """Per-channel vector (C,) -> (1, W*C) in the folded lane layout."""
    return jnp.tile(v.astype(jnp.float32), W).reshape(1, -1)


def prepare_params(params, *, N, H, W, Cin, Cout, use_1x1conv):
    """Parameter-only preprocessing, hoisted out of the per-forward path."""
    PWLI = _pad_lanes(W * Cin)
    prep = {
        "w1": _band3x3_fused(params["w1"], W, PWLI).astype(jnp.bfloat16),
        "w2": _band3x3_fused(params["w2"], W, W * Cout).astype(jnp.bfloat16),
        "g1": _tile_c(params["g1"], W), "be1": _tile_c(params["be1"], W),
        "g2": _tile_c(params["g2"], W), "be2": _tile_c(params["be2"], W),
        # Group-sum + lane broadcast + 1/(N*H*W) for BN stats, as one constant matrix.
        "p": jnp.asarray(np.kron(np.ones((W, W), np.float32),
                                 np.eye(Cout, dtype=np.float32)) / float(N * H * W)),
    }
    if use_1x1conv:
        prep["w3"] = _band1x1(params["w3"][:, :, 0, 0], W, PWLI).astype(jnp.bfloat16)
        prep["b3"] = _tile_c(params["b3"], W)
    return jax.device_put(prep)


@functools.partial(jax.jit, static_argnames=("use_1x1conv", "eps"))
def residual_forward(x_nchw, prep, *, use_1x1conv, eps=1e-5):
    """PyTorch-equivalent forward. x_nchw: (N, Cin, H, W). Returns (N, Cout, H, W)."""
    N, Cin, H, W = x_nchw.shape
    Cout = prep["p"].shape[0] // W
    if not use_1x1conv and Cin != Cout:
        raise ValueError("use_1x1conv=False requires Cin == Cout")
    WLI, WLO = W * Cin, W * Cout
    PWLI = _pad_lanes(WLI)
    R = N * H

    # NCHW -> W-folded rows (lane index = w*Cin + c), lane-padded to PWLI.
    x_rows = jnp.transpose(x_nchw, (0, 2, 3, 1)).astype(jnp.float32).reshape(R, WLI)
    if PWLI > WLI:
        x_rows = jnp.pad(x_rows, ((0, 0), (0, PWLI - WLI)))

    kernel = functools.partial(residual_kernel, N=N, H=H, Cout_lanes=WLO,
                               eps=eps, use_1x1conv=use_1x1conv)
    vmem = pl.BlockSpec(memory_space=pltpu.MemorySpace.VMEM)
    operands = [x_rows, prep["w1"], prep["g1"], prep["be1"],
                prep["w2"], prep["g2"], prep["be2"], prep["p"]]
    if use_1x1conv:
        operands += [prep["w3"], prep["b3"]]

    out_rows = pl.pallas_call(
        kernel,
        out_shape=jax.ShapeDtypeStruct((R, WLO), jnp.float32),
        in_specs=[vmem] * len(operands),
        out_specs=vmem,
    )(*operands)

    # Lane-dense (N*H, W*Cout) slab -> NCHW.
    return jnp.transpose(out_rows.reshape(N, H, W, Cout), (0, 3, 1, 2))


def reference_forward(x, params, *, use_1x1conv, eps=1e-5):
    """Pure-JAX reference mirroring the PyTorch module (NCHW, training-mode BN)."""
    def conv(x, w, b, pad):
        y = jax.lax.conv_general_dilated(
            x, w, window_strides=(1, 1), padding=[(pad, pad), (pad, pad)],
            dimension_numbers=("NCHW", "OIHW", "NCHW"))
        return y + b[None, :, None, None]

    def bn(y, g, be):
        mean = jnp.mean(y, axis=(0, 2, 3), keepdims=True)
        var = jnp.mean((y - mean) ** 2, axis=(0, 2, 3), keepdims=True)
        return ((y - mean) * jax.lax.rsqrt(var + eps)
                * g[None, :, None, None] + be[None, :, None, None])

    Y = jax.nn.relu(bn(conv(x, params["w1"], params["b1"], 1), params["g1"], params["be1"]))
    Y = bn(conv(Y, params["w2"], params["b2"], 1), params["g2"], params["be2"])
    X = conv(x, params["w3"], params["b3"], 0) if use_1x1conv else x
    return jax.nn.relu(Y + X)


def init_params(key, Cin, Cout, use_1x1conv):
    ks = jax.random.split(key, 6)
    params = {
        "w1": 0.1 * jax.random.normal(ks[0], (Cout, Cin, 3, 3), jnp.float32),
        "b1": 0.1 * jax.random.normal(ks[1], (Cout,), jnp.float32),
        "w2": 0.1 * jax.random.normal(ks[2], (Cout, Cout, 3, 3), jnp.float32),
        "b2": 0.1 * jax.random.normal(ks[3], (Cout,), jnp.float32),
        "g1": jnp.ones((Cout,), jnp.float32),
        "be1": jnp.zeros((Cout,), jnp.float32),
        "g2": jnp.ones((Cout,), jnp.float32),
        "be2": jnp.zeros((Cout,), jnp.float32),
    }
    if use_1x1conv:
        params["w3"] = 0.1 * jax.random.normal(ks[4], (Cout, Cin, 1, 1), jnp.float32)
        params["b3"] = 0.1 * jax.random.normal(ks[5], (Cout,), jnp.float32)
    return params


if __name__ == "__main__":
    key = jax.random.PRNGKey(0)
    N, Cin, Cout, H, W = 2, 4, 8, 16, 16          # W * Cout = 128 -> lane-dense output
    use_1x1conv = True

    kx, kp = jax.random.split(key)
    x = jax.random.uniform(kx, (N, Cin, H, W), jnp.float32)      # like torch.rand
    params = init_params(kp, Cin, Cout, use_1x1conv)

    # Parameter preprocessing done once, outside the per-forward path.
    prep = prepare_params(params, N=N, H=H, W=W, Cin=Cin, Cout=Cout,
                          use_1x1conv=use_1x1conv)

    out = jax.block_until_ready(residual_forward(x, prep, use_1x1conv=use_1x1conv))
    ref = jax.block_until_ready(reference_forward(x, params, use_1x1conv=use_1x1conv))

    assert out.shape == (N, Cout, H, W)
    # Tolerance reflects bf16 MXU operands (f32 accumulation) vs. the f32 reference.
    np.testing.assert_allclose(np.asarray(out), np.asarray(ref), rtol=5e-2, atol=5e-2)

    print("KERNEL_OK")
</pallas_src>

<mosaic_0001>
module attributes {stable_mosaic.version = 11 : i64} {
  func.func @residual_kernel(%arg0: memref<32x128xf32, #tpu.memory_space<vmem>>, %arg1: memref<384x128xbf16, #tpu.memory_space<vmem>>, %arg2: memref<1x128xf32, #tpu.memory_space<vmem>>, %arg3: memref<1x128xf32, #tpu.memory_space<vmem>>, %arg4: memref<384x128xbf16, #tpu.memory_space<vmem>>, %arg5: memref<1x128xf32, #tpu.memory_space<vmem>>, %arg6: memref<1x128xf32, #tpu.memory_space<vmem>>, %arg7: memref<128x128xf32, #tpu.memory_space<vmem>>, %arg8: memref<128x128xbf16, #tpu.memory_space<vmem>>, %arg9: memref<1x128xf32, #tpu.memory_space<vmem>>, %arg10: memref<32x128xf32, #tpu.memory_space<vmem>>) attributes {dimension_semantics = [], scalar_prefetch = 0 : i64, scratch_operands = 0 : i64, tpu.core_type = #tpu.core_type<tc>} {
    %0 = tpu.iota {dimensions = array<i32: 0>} : vector<32x1xi32>
    %c16_i32 = arith.constant 16 : i32
    %c0_i32 = arith.constant 0 : i32
    %1 = arith.cmpi eq, %c16_i32, %c0_i32 : i32
    %c1_i32 = arith.constant 1 : i32
    %2 = arith.select %1, %c1_i32, %c16_i32 : i32
    %3 = vector.broadcast %2 : i32 to vector<32x1xi32>
    %4 = arith.remsi %0, %3 : vector<32x1xi32>
    %c0_i32_0 = arith.constant 0 : i32
    %5 = vector.broadcast %c0_i32_0 : i32 to vector<32x1xi32>
    %6 = arith.cmpi ne, %4, %5 : vector<32x1xi32>
    %c0_i32_1 = arith.constant 0 : i32
    %7 = vector.broadcast %c0_i32_1 : i32 to vector<32x1xi32>
    %8 = arith.cmpi slt, %4, %7 : vector<32x1xi32>
    %c0_i32_2 = arith.constant 0 : i32
    %9 = arith.cmpi slt, %2, %c0_i32_2 : i32
    %10 = vector.broadcast %9 : i1 to vector<32x1xi1>
    %11 = vector.broadcast %10 : vector<32x1xi1> to vector<32x1xi1>
    %12 = arith.xori %8, %11 : vector<32x1xi1>
    %13 = arith.andi %12, %6 : vector<32x1xi1>
    %14 = vector.broadcast %2 : i32 to vector<32x1xi32>
    %15 = arith.addi %4, %14 : vector<32x1xi32>
    %16 = arith.select %13, %15, %4 : vector<32x1xi1>, vector<32x1xi32>
    %c0_i32_3 = arith.constant 0 : i32
    %17 = vector.broadcast %c0_i32_3 : i32 to vector<32x1xi32>
    %18 = arith.cmpi ne, %16, %17 : vector<32x1xi32>
    %c15_i32 = arith.constant 15 : i32
    %19 = vector.broadcast %c15_i32 : i32 to vector<32x1xi32>
    %20 = arith.cmpi ne, %16, %19 : vector<32x1xi32>
    %c0 = arith.constant 0 : index
    %c0_4 = arith.constant 0 : index
    %21 = vector.load %arg0[%c0, %c0_4] : memref<32x128xf32, #tpu.memory_space<vmem>>, vector<32x128xf32>
    %c1_i32_5 = arith.constant 1 : i32
    %22 = tpu.dynamic_rotate %21 by %c1_i32_5 dim 0 : vector<32x128xf32>, i32 -> vector<32x128xf32>
    %cst = arith.constant 0.000000e+00 : f32
    %23 = vector.shape_cast %18 : vector<32x1xi1> to vector<32x1xi1>
    %24 = vector.broadcast %23 : vector<32x1xi1> to vector<32x128xi1>
    %25 = vector.broadcast %cst : f32 to vector<32x128xf32>
    %26 = arith.select %24, %22, %25 : vector<32x128xi1>, vector<32x128xf32>
    %c31_i32 = arith.constant 31 : i32
    %27 = tpu.dynamic_rotate %21 by %c31_i32 dim 0 : vector<32x128xf32>, i32 -> vector<32x128xf32>
    %cst_6 = arith.constant 0.000000e+00 : f32
    %28 = vector.shape_cast %20 : vector<32x1xi1> to vector<32x1xi1>
    %29 = vector.broadcast %28 : vector<32x1xi1> to vector<32x128xi1>
    %30 = vector.broadcast %cst_6 : f32 to vector<32x128xf32>
    %31 = arith.select %29, %27, %30 : vector<32x128xi1>, vector<32x128xf32>
    %32 = tpu.concatenate %26, %21, %31 in 1 : vector<32x128xf32>, vector<32x128xf32>, vector<32x128xf32> -> vector<32x384xf32>
    %33 = arith.truncf %32 : vector<32x384xf32> to vector<32x384xbf16>
    %c0_7 = arith.constant 0 : index
    %c0_8 = arith.constant 0 : index
    %34 = vector.load %arg1[%c0_7, %c0_8] : memref<384x128xbf16, #tpu.memory_space<vmem>>, vector<384x128xbf16>
    %cst_9 = arith.constant dense<0.000000e+00> : vector<32x128xf32>
    %35 = tpu.matmul %33, %34, %cst_9 {dimension_numbers = #tpu.dot_dimension_numbers<[1], [0], [0], [1], [0, 0, 1, 1], [], []>} : vector<32x384xbf16>, vector<384x128xbf16>, vector<32x128xf32> -> vector<32x128xf32>
    %cst_10 = arith.constant dense<0.000000e+00> : vector<128xf32>
    %36 = vector.multi_reduction <add>, %35, %cst_10 [0] : vector<32x128xf32> to vector<128xf32>
    %37 = vector.shape_cast %36 : vector<128xf32> to vector<1x128xf32>
    %38 = arith.mulf %35, %35 : vector<32x128xf32>
    %cst_11 = arith.constant dense<0.000000e+00> : vector<128xf32>
    %39 = vector.multi_reduction <add>, %38, %cst_11 [0] : vector<32x128xf32> to vector<128xf32>
    %40 = vector.shape_cast %39 : vector<128xf32> to vector<1x128xf32>
    %41 = tpu.concatenate %37, %40 in 0 : vector<1x128xf32>, vector<1x128xf32> -> vector<2x128xf32>
    %c0_12 = arith.constant 0 : index
    %c0_13 = arith.constant 0 : index
    %42 = vector.load %arg7[%c0_12, %c0_13] : memref<128x128xf32, #tpu.memory_space<vmem>>, vector<128x128xf32>
    %cst_14 = arith.constant dense<0.000000e+00> : vector<2x128xf32>
    %43 = tpu.matmul %41, %42, %cst_14 {dimension_numbers = #tpu.dot_dimension_numbers<[1], [0], [0], [1], [0, 0, 1, 1], [], []>} : vector<2x128xf32>, vector<128x128xf32>, vector<2x128xf32> -> vector<2x128xf32>
    %44 = vector.extract_strided_slice %43 {offsets = [0, 0], sizes = [1, 128], strides = [1, 1]} : vector<2x128xf32> to vector<1x128xf32>
    %45 = vector.extract_strided_slice %43 {offsets = [1, 0], sizes = [1, 128], strides = [1, 1]} : vector<2x128xf32> to vector<1x128xf32>
    %46 = arith.mulf %44, %44 : vector<1x128xf32>
    %47 = arith.subf %45, %46 : vector<1x128xf32>
    %cst_15 = arith.constant 0.000000e+00 : f32
    %48 = vector.broadcast %cst_15 : f32 to vector<1x128xf32>
    %49 = arith.maximumf %47, %48 : vector<1x128xf32>
    %c0_16 = arith.constant 0 : index
    %c0_17 = arith.constant 0 : index
    %50 = vector.load %arg2[%c0_16, %c0_17] : memref<1x128xf32, #tpu.memory_space<vmem>>, vector<1x128xf32>
    %cst_18 = arith.constant 9.99999974E-6 : f32
    %51 = vector.broadcast %cst_18 : f32 to vector<1x128xf32>
    %52 = arith.addf %49, %51 : vector<1x128xf32>
    %53 = math.rsqrt %52 : vector<1x128xf32>
    %54 = arith.mulf %50, %53 : vector<1x128xf32>
    %c0_19 = arith.constant 0 : index
    %c0_20 = arith.constant 0 : index
    %55 = vector.load %arg3[%c0_19, %c0_20] : memref<1x128xf32, #tpu.memory_space<vmem>>, vector<1x128xf32>
    %56 = arith.mulf %44, %54 : vector<1x128xf32>
    %57 = arith.subf %55, %56 : vector<1x128xf32>
    %58 = vector.broadcast %54 : vector<1x128xf32> to vector<32x128xf32>
    %59 = arith.mulf %35, %58 : vector<32x128xf32>
    %60 = vector.broadcast %57 : vector<1x128xf32> to vector<32x128xf32>
    %61 = arith.addf %59, %60 : vector<32x128xf32>
    %cst_21 = arith.constant 0.000000e+00 : f32
    %62 = vector.broadcast %cst_21 : f32 to vector<32x128xf32>
    %63 = arith.maximumf %61, %62 : vector<32x128xf32>
    %c1_i32_22 = arith.constant 1 : i32
    %64 = tpu.dynamic_rotate %63 by %c1_i32_22 dim 0 : vector<32x128xf32>, i32 -> vector<32x128xf32>
    %cst_23 = arith.constant 0.000000e+00 : f32
    %65 = vector.shape_cast %18 : vector<32x1xi1> to vector<32x1xi1>
    %66 = vector.broadcast %65 : vector<32x1xi1> to vector<32x128xi1>
    %67 = vector.broadcast %cst_23 : f32 to vector<32x128xf32>
    %68 = arith.select %66, %64, %67 : vector<32x128xi1>, vector<32x128xf32>
    %c31_i32_24 = arith.constant 31 : i32
    %69 = tpu.dynamic_rotate %63 by %c31_i32_24 dim 0 : vector<32x128xf32>, i32 -> vector<32x128xf32>
    %cst_25 = arith.constant 0.000000e+00 : f32
    %70 = vector.shape_cast %20 : vector<32x1xi1> to vector<32x1xi1>
    %71 = vector.broadcast %70 : vector<32x1xi1> to vector<32x128xi1>
    %72 = vector.broadcast %cst_25 : f32 to vector<32x128xf32>
    %73 = arith.select %71, %69, %72 : vector<32x128xi1>, vector<32x128xf32>
    %74 = tpu.concatenate %68, %63, %73 in 1 : vector<32x128xf32>, vector<32x128xf32>, vector<32x128xf32> -> vector<32x384xf32>
    %75 = arith.truncf %74 : vector<32x384xf32> to vector<32x384xbf16>
    %c0_26 = arith.constant 0 : index
    %c0_27 = arith.constant 0 : index
    %76 = vector.load %arg4[%c0_26, %c0_27] : memref<384x128xbf16, #tpu.memory_space<vmem>>, vector<384x128xbf16>
    %cst_28 = arith.constant dense<0.000000e+00> : vector<32x128xf32>
    %77 = tpu.matmul %75, %76, %cst_28 {dimension_numbers = #tpu.dot_dimension_numbers<[1], [0], [0], [1], [0, 0, 1, 1], [], []>} : vector<32x384xbf16>, vector<384x128xbf16>, vector<32x128xf32> -> vector<32x128xf32>
    %cst_29 = arith.constant dense<0.000000e+00> : vector<128xf32>
    %78 = vector.multi_reduction <add>, %77, %cst_29 [0] : vector<32x128xf32> to vector<128xf32>
    %79 = vector.shape_cast %78 : vector<128xf32> to vector<1x128xf32>
    %80 = arith.mulf %77, %77 : vector<32x128xf32>
    %cst_30 = arith.constant dense<0.000000e+00> : vector<128xf32>
    %81 = vector.multi_reduction <add>, %80, %cst_30 [0] : vector<32x128xf32> to vector<128xf32>
    %82 = vector.shape_cast %81 : vector<128xf32> to vector<1x128xf32>
    %83 = tpu.concatenate %79, %82 in 0 : vector<1x128xf32>, vector<1x128xf32> -> vector<2x128xf32>
    %c0_31 = arith.constant 0 : index
    %c0_32 = arith.constant 0 : index
    %84 = vector.load %arg7[%c0_31, %c0_32] : memref<128x128xf32, #tpu.memory_space<vmem>>, vector<128x128xf32>
    %cst_33 = arith.constant dense<0.000000e+00> : vector<2x128xf32>
    %85 = tpu.matmul %83, %84, %cst_33 {dimension_numbers = #tpu.dot_dimension_numbers<[1], [0], [0], [1], [0, 0, 1, 1], [], []>} : vector<2x128xf32>, vector<128x128xf32>, vector<2x128xf32> -> vector<2x128xf32>
    %86 = vector.extract_strided_slice %85 {offsets = [0, 0], sizes = [1, 128], strides = [1, 1]} : vector<2x128xf32> to vector<1x128xf32>
    %87 = vector.extract_strided_slice %85 {offsets = [1, 0], sizes = [1, 128], strides = [1, 1]} : vector<2x128xf32> to vector<1x128xf32>
    %88 = arith.mulf %86, %86 : vector<1x128xf32>
    %89 = arith.subf %87, %88 : vector<1x128xf32>
    %cst_34 = arith.constant 0.000000e+00 : f32
    %90 = vector.broadcast %cst_34 : f32 to vector<1x128xf32>
    %91 = arith.maximumf %89, %90 : vector<1x128xf32>
    %c0_35 = arith.constant 0 : index
    %c0_36 = arith.constant 0 : index
    %92 = vector.load %arg5[%c0_35, %c0_36] : memref<1x128xf32, #tpu.memory_space<vmem>>, vector<1x128xf32>
    %cst_37 = arith.constant 9.99999974E-6 : f32
    %93 = vector.broadcast %cst_37 : f32 to vector<1x128xf32>
    %94 = arith.addf %91, %93 : vector<1x128xf32>
    %95 = math.rsqrt %94 : vector<1x128xf32>
    %96 = arith.mulf %92, %95 : vector<1x128xf32>
    %c0_38 = arith.constant 0 : index
    %c0_39 = arith.constant 0 : index
    %97 = vector.load %arg6[%c0_38, %c0_39] : memref<1x128xf32, #tpu.memory_space<vmem>>, vector<1x128xf32>
    %98 = arith.mulf %86, %96 : vector<1x128xf32>
    %99 = arith.subf %97, %98 : vector<1x128xf32>
    %100 = vector.broadcast %96 : vector<1x128xf32> to vector<32x128xf32>
    %101 = arith.mulf %77, %100 : vector<32x128xf32>
    %102 = vector.broadcast %99 : vector<1x128xf32> to vector<32x128xf32>
    %103 = arith.addf %101, %102 : vector<32x128xf32>
    %104 = arith.truncf %21 : vector<32x128xf32> to vector<32x128xbf16>
    %c0_40 = arith.constant 0 : index
    %c0_41 = arith.constant 0 : index
    %105 = vector.load %arg8[%c0_40, %c0_41] : memref<128x128xbf16, #tpu.memory_space<vmem>>, vector<128x128xbf16>
    %cst_42 = arith.constant dense<0.000000e+00> : vector<32x128xf32>
    %106 = tpu.matmul %104, %105, %cst_42 {dimension_numbers = #tpu.dot_dimension_numbers<[1], [0], [0], [1], [0, 0, 1, 1], [], []>} : vector<32x128xbf16>, vector<128x128xbf16>, vector<32x128xf32> -> vector<32x128xf32>
    %c0_43 = arith.constant 0 : index
    %c0_44 = arith.constant 0 : index
    %107 = vector.load %arg9[%c0_43, %c0_44] : memref<1x128xf32, #tpu.memory_space<vmem>>, vector<1x128xf32>
    %108 = vector.broadcast %107 : vector<1x128xf32> to vector<32x128xf32>
    %109 = arith.addf %106, %108 : vector<32x128xf32>
    %110 = arith.addf %103, %109 : vector<32x128xf32>
    %cst_45 = arith.constant 0.000000e+00 : f32
    %111 = vector.broadcast %cst_45 : f32 to vector<32x128xf32>
    %112 = arith.maximumf %110, %111 : vector<32x128xf32>
    %c0_46 = arith.constant 0 : index
    %c0_47 = arith.constant 0 : index
    %113 = vector.load %arg10[%c0_46, %c0_47] : memref<32x128xf32, #tpu.memory_space<vmem>>, vector<32x128xf32>
    tpu.vector_store %arg10[%c0_46, %c0_47], %112 {strides = array<i32>} : memref<32x128xf32, #tpu.memory_space<vmem>>, vector<32x128xf32>,
    return
  }
}

</mosaic_0001>

<bundles_post_ra>
// kernel: residual_forward.1
= control target key start
LH: loop header
LB: loop body
LE: loop exit
PB: predicated region body
PF: predicated region fallthrough
CT: control target
= control target key end

     0   :  { %v35_v12 = vlaneseq  ;;  %vm1278_vm4 = vmmov 1   ;;  %vm419_vm11 = vcmask 1040384   ;;  %s1717_s1 = inlined_call_operand.vmem [shape: bf16[384,128], index: 1, kind: input, shape index: {}]   ;;  %s1718_s0 = inlined_call_operand.vmem [shape: f32[32,128], index: 0, kind: input, shape index: {}]   ;;  %s1719_s7 = inlined_call_operand.vmem [shape: f32[128,128], index: 7, kind: input, shape index: {}]   ;;  %s1720_s4 = inlined_call_operand.vmem [shape: bf16[384,128], index: 4, kind: input, shape index: {}]   ;;  %s1721_s2 = inlined_call_operand.vmem [shape: f32[1,128], index: 2, kind: input, shape index: {}]   ;;  %s1722_s3 = inlined_call_operand.vmem [shape: f32[1,128], index: 3, kind: input, shape index: {}]   ;;  %s1723_s8 = inlined_call_operand.vmem [shape: bf16[128,128], index: 8, kind: input, shape index: {}]   ;;  %s1724_s9 = inlined_call_operand.vmem [shape: f32[1,128], index: 9, kind: input, shape index: {}]   ;;  %s1725_s5 = inlined_call_operand.vmem [shape: f32[1,128], index: 5, kind: input, shape index: {}]   ;;  %s1726_s6 = inlined_call_operand.vmem [shape: f32[1,128], index: 6, kind: input, shape index: {}]   ;;  %s1727_s10 = inlined_call_operand.vmem [shape: f32[32,128], index: 10, kind: output, shape index: {}]  }
   0x1   :  { %v1223_v0 = vld [vmem:[%s1717_s1 + $0x38] sm:$0xff]  ;;  %v1222_v3 = vld [vmem:[%s1717_s1 + $0x30] sm:$0xff]  ;;  %v1221_v6 = vld [vmem:[%s1717_s1 + $0x28] sm:$0xff] }
   0x2   :  { %v1231_v1 = vld [vmem:[%s1717_s1 + $0x78] sm:$0xff]  ;;  %340 = vmatpush.bf16.msra.mxu3 %v1223_v0  ;;  %v1230_v4 = vld [vmem:[%s1717_s1 + $0x70] sm:$0xff]  ;;  %v1229_v7 = vld [vmem:[%s1717_s1 + $0x68] sm:$0xff]  ;;  %v1379_v16 = vshrl.u32 %v35_v12, 7 }
   0x3   :  { %v1239_v2 = vld [vmem:[%s1717_s1 + $0xb8] sm:$0xff]  ;;  %359 = vmatpush.bf16.msra.mxu1 %v1231_v1  ;;  %v1238_v5 = vld [vmem:[%s1717_s1 + $0xb0] sm:$0xff]  ;;  %v1237_v8 = vld [vmem:[%s1717_s1 + $0xa8] sm:$0xff] }
   0x4   :  { %378 = vmatpush.bf16.msra.mxu2 %v1239_v2  ;;  %v1220_v9 = vld [vmem:[%s1717_s1 + $0x20] sm:$0xff]  ;;  %v1219_v13 = vld [vmem:[%s1717_s1 + $0x18] sm:$0xff]  ;;  %v1218_v17 = vld [vmem:[%s1717_s1 + $0x10] sm:$0xff]  ;;  %v37_v23 = vadd.s32 8, %v1379_v16  ;;  %v44_v27 = vand.u32 15, %v1379_v16  ;;  %vm104_vm0 = vcmp.lt.s32.totalorder %v1379_v16, 1 }
   0x5   :  { %v1228_v10 = vld [vmem:[%s1717_s1 + $0x60] sm:$0xff]  ;;  %v1227_v14 = vld [vmem:[%s1717_s1 + $0x58] sm:$0xff]  ;;  %v1226_v18 = vld [vmem:[%s1717_s1 + $0x50] sm:$0xff]  ;;  %vm125_vm1 = vcmp.lt.s32.totalorder %v1379_v16, 7  ;;  %v38_v48 = vadd.s32 16, %v1379_v16  ;;  %v39_v49 = vadd.s32 24, %v1379_v16 }
   0x6   :  { %341 = vmatpush.bf16.msra.mxu3 %v1222_v3  ;;  %v1236_v11 = vld [vmem:[%s1717_s1 + $0xa0] sm:$0xff]  ;;  %v1235_v15 = vld [vmem:[%s1717_s1 + $0x98] sm:$0xff]  ;;  %v1234_v19 = vld [vmem:[%s1717_s1 + $0x90] sm:$0xff]  ;;  %v51_v35 = vand.u32 15, %v37_v23  ;;  %vm88_vm2 = vcmp.ne.s32.totalorder %v44_v27, 0 }
   0x7   :  { %360 = vmatpush.bf16.msra.mxu1 %v1230_v4  ;;  %v96_v20 = vld [vmem:[%s1718_s0] sm:$0xff]  ;;  %v97_v21 = vld [vmem:[%s1718_s0 + $0x8] sm:$0xff]  ;;  %v99_v22 = vld [vmem:[%s1718_s0 + $0x18] sm:$0xff]  ;;  %v58_v51 = vand.u32 15, %v38_v48  ;;  %v65_v53 = vand.u32 15, %v39_v49 }
   0x8   :  { %379 = vmatpush.bf16.msra.mxu2 %v1238_v5  ;;  %v98_v24 = vld [vmem:[%s1718_s0 + $0x10] sm:$0xff]  ;;  %v1217_v25 = vld [vmem:[%s1717_s1 + $0x8] sm:$0xff]  ;;  %v100_v28 = vrot.slane %v96_v20, 7  ;;  %v101_v29 = vrot.slane %v97_v21, 7  ;;  %v103_v30 = vrot.slane %v99_v22, 7  ;;  %v121_v32 = vrot.slane %v96_v20, 1  ;;  %vm1435_vm5 = vmpackc.low %vm1278_vm4, %vm88_vm2 }
   0x9   :  { %v1225_v26 = vld [vmem:[%s1717_s1 + $0x48] sm:$0xff]  ;;  %v122_v33 = vrot.slane %v97_v21, 1  ;;  %v123_v34 = vrot.slane %v98_v24, 1  ;;  %v1216_v36 = vld [vmem:[%s1717_s1] sm:$0xff]  ;;  %vm93_vm3 = vcmp.ne.s32.totalorder %v51_v35, 15  ;;  %v1432_v44 = vpack.c.bf16 %v97_v21, %v96_v20  ;;  %v436_v63 = vld [vmem:[%s1719_s7 + $0x78] sm:$0xff] }
   0xa   :  { %342 = vmatpush.bf16.msra.mxu3 %v1221_v6  ;;  %v1233_v31 = vld [vmem:[%s1717_s1 + $0x88] sm:$0xff]  ;;  %v1224_v37 = vld [vmem:[%s1717_s1 + $0x40] sm:$0xff]  ;;  %v107_v38 = vsel %vm104_vm0, %v100_v28, %v101_v29  ;;  %v108_v39 = vsel %vm104_vm0, %v103_v30, %v100_v28  ;;  %vm1440_vm6 = vmpackc.low %vm93_vm3, %vm1278_vm4  ;;  %v102_v50 = vrot.slane %v98_v24, 7  ;;  %v124_v52 = vrot.slane %v99_v22, 1 }
   0xb   :  { %361 = vmatpush.bf16.msra.mxu1 %v1229_v7  ;;  %v1232_v40 = vld [vmem:[%s1717_s1 + $0x80] sm:$0xff]  ;;  %v127_v41 = vsel %vm125_vm1, %v122_v33, %v123_v34  ;;  %v128_v42 = vsel %vm125_vm1, %v121_v32, %v122_v33  ;;  %v1065_v43 = vpack.c.bf16 %v107_v38, %v108_v39  ;;  %vm90_vm7 = vcmp.ne.s32.totalorder %v58_v51, 0  ;;  %v435_v0 = vld [vmem:[%s1719_s7 + $0x70] sm:$0xff]  ;;  %v434_v1 = vld [vmem:[%s1719_s7 + $0x68] sm:$0xff] }
   0xc   :  { %380 = vmatpush.bf16.msra.mxu2 %v1237_v8  ;;  %v1071_v46 = vpack.c.bf16 %v127_v41, %v128_v42  ;;  %v105_v54 = vsel %vm104_vm0, %v102_v50, %v103_v30  ;;  %v106_v55 = vsel %vm104_vm0, %v101_v29, %v102_v50  ;;  %v126_v56 = vsel %vm125_vm1, %v123_v34, %v124_v52  ;;  %vm1462_vm9 = vmpackc.low %vm1278_vm4, %vm90_vm7  ;;  %v433_v2 = vld [vmem:[%s1719_s7 + $0x60] sm:$0xff]  ;;  %v432_v3 = vld [vmem:[%s1719_s7 + $0x58] sm:$0xff] }
   0xd   :  { %v129_v57 = vsel %vm125_vm1, %v124_v52, %v121_v32  ;;  %vm95_vm8 = vcmp.ne.s32.totalorder %v65_v53, 15  ;;  %v1068_v58 = vpack.c.bf16 %v105_v54, %v106_v55  ;;  %v1459_v59 = vpack.c.bf16 %v99_v22, %v98_v24  ;;  %v431_v4 = vld [vmem:[%s1719_s7 + $0x50] sm:$0xff]  ;;  %v430_v6 = vld [vmem:[%s1719_s7 + $0x48] sm:$0xff]  ;;  %v429_v7 = vld [vmem:[%s1719_s7 + $0x40] sm:$0xff] }
   0xe   :  { %343 = vmatpush.bf16.msra.mxu3 %v1220_v9  ;;  %v1074_v61 = vpack.c.bf16 %v129_v57, %v126_v56  ;;  %vm1467_vm10 = vmpackc.low %vm95_vm8, %vm1278_vm4  ;;  %v428_v8 = vld [vmem:[%s1719_s7 + $0x38] sm:$0xff]  ;;  %v426_v12 = vld [vmem:[%s1719_s7 + $0x28] sm:$0xff] }
   0xf   :  { %362 = vmatpush.bf16.msra.mxu1 %v1228_v10  ;;  %v422_v20 = vld [vmem:[%s1719_s7 + $0x8] sm:$0xff]  ;;  %v421_v21 = vld [vmem:[%s1719_s7] sm:$0xff] }
  0x10   :  { %381 = vmatpush.bf16.msra.mxu2 %v1236_v11  ;;  %v427_v11 = vld [vmem:[%s1719_s7 + $0x30] sm:$0xff]  ;;  %v1269_v60 = vld [vmem:[%s1723_s8 + $0x28] sm:$0xff] }
  0x12   :  { %344 = vmatpush.bf16.msra.mxu3 %v1219_v13  ;;  %v425_v13 = vld [vmem:[%s1719_s7 + $0x20] sm:$0xff] }
  0x13   :  { %363 = vmatpush.bf16.msra.mxu1 %v1227_v14 }
  0x14   :  { %382 = vmatpush.bf16.msra.mxu2 %v1235_v15  ;;  %v424_v15 = vld [vmem:[%s1719_s7 + $0x18] sm:$0xff] }
  0x16   :  { %345 = vmatpush.bf16.msra.mxu3 %v1218_v17  ;;  %v423_v17 = vld [vmem:[%s1719_s7 + $0x10] sm:$0xff] }
  0x17   :  { %364 = vmatpush.bf16.msra.mxu1 %v1226_v18 }
  0x18   :  { %383 = vmatpush.bf16.msra.mxu2 %v1234_v19 }
  0x1a   :  { %346 = vmatpush.bf16.msra.mxu3 %v1217_v25 }
  0x1b   :  { %365 = vmatpush.bf16.msra.mxu1 %v1225_v26 }
  0x1c   :  { %384 = vmatpush.bf16.msra.mxu2 %v1233_v31 }
  0x1e   :  { %347 = vmatpush.bf16.msra.mxu3 %v1216_v36 }
  0x1f   :  { %366 = vmatpush.bf16.msra.mxu1 %v1224_v37 }
  0x20   :  { %385 = vmatpush.bf16.msra.mxu2 %v1232_v40 }
  0x21   :  { %1066 = vmatmul.msk.bf16.vlgmr.msra.gmra.mxu3 %vm1435_vm5, %v1065_v43 }
  0x22   :  { %367 = vmatmul.bf16.vlgmr.msra.gmra.mxu1 %v1432_v44  ;;  %437 = vmatpush.msrb.mxu3 %v436_v63 }
  0x23   :  { %1072 = vmatmul.msk.bf16.vlgmr.msra.gmra.mxu2 %vm1440_vm6, %v1071_v46 }
  0x24   :  { %438 = vmatpush.msrb.mxu3 %v435_v0 }
  0x26   :  { %439 = vmatpush.msrb.mxu3 %v434_v1 }
  0x28   :  { %440 = vmatpush.msrb.mxu3 %v433_v2 }
  0x2a   :  { %441 = vmatpush.msrb.mxu3 %v432_v3 }
  0x2c   :  { %442 = vmatpush.msrb.mxu3 %v431_v4 }
  0x2e   :  { %443 = vmatpush.msrb.mxu3 %v430_v6 }
  0x30   :  { %444 = vmatpush.msrb.mxu3 %v429_v7 }
  0x31   :  { %1069 = vmatmul.msk.bf16.gmra.mxu3 %vm1462_vm9, %v1068_v58 }
  0x32   :  { %372 = vmatmul.bf16.gmra.mxu1 %v1459_v59  ;;  %445 = vmatpush.msrb.mxu3 %v428_v8 }
  0x33   :  { %1075 = vmatmul.msk.bf16.gmra.mxu2 %vm1467_vm10, %v1074_v61 }
  0x34   :  { %446 = vmatpush.msrb.mxu3 %v427_v11 }
  0x36   :  { %447 = vmatpush.msrb.mxu3 %v426_v12 }
  0x38   :  { %448 = vmatpush.msrb.mxu3 %v425_v13 }
  0x3a   :  { %449 = vmatpush.msrb.mxu3 %v424_v15 }
  0x3c   :  { %450 = vmatpush.msrb.mxu3 %v423_v17 }
  0x3e   :  { %451 = vmatpush.msrb.mxu3 %v422_v20 }
  0x40   :  { %452 = vmatpush.msrb.mxu3 %v421_v21 }
  0x42   :  { %804 = vmatpush.msra.mxu3 %v436_v63 }
  0x44   :  { %805 = vmatpush.msra.mxu3 %v435_v0 }
  0x46   :  { %806 = vmatpush.msra.mxu3 %v434_v1  ;;  %v1255_v1 = vld [vmem:[%s1720_s4 + $0x78] sm:$0xff] }
  0x47   :  { %743 = vmatpush.bf16.msrb.mxu1 %v1255_v1 }
  0x48   :  { %807 = vmatpush.msra.mxu3 %v433_v2  ;;  %v1263_v2 = vld [vmem:[%s1720_s4 + $0xb8] sm:$0xff] }
  0x49   :  { %762 = vmatpush.bf16.msrb.mxu2 %v1263_v2 }
  0x4a   :  { %808 = vmatpush.msra.mxu3 %v432_v3  ;;  %v1247_v3 = vld [vmem:[%s1720_s4 + $0x38] sm:$0xff] }
  0x4b   :  { %724 = vmatpush.bf16.msra.mxu0 %v1247_v3 }
  0x4c   :  { %809 = vmatpush.msra.mxu3 %v431_v4  ;;  %v1254_v4 = vld [vmem:[%s1720_s4 + $0x70] sm:$0xff] }
  0x4d   :  { %744 = vmatpush.bf16.msrb.mxu1 %v1254_v4 }
  0x4e   :  { %810 = vmatpush.msra.mxu3 %v430_v6  ;;  %v1246_v6 = vld [vmem:[%s1720_s4 + $0x30] sm:$0xff] }
  0x4f   :  { %725 = vmatpush.bf16.msra.mxu0 %v1246_v6 }
  0x50   :  { %811 = vmatpush.msra.mxu3 %v429_v7  ;;  %v1253_v7 = vld [vmem:[%s1720_s4 + $0x68] sm:$0xff] }
  0x51   :  { %745 = vmatpush.bf16.msrb.mxu1 %v1253_v7 }
  0x52   :  { %812 = vmatpush.msra.mxu3 %v428_v8  ;;  %v1261_v8 = vld [vmem:[%s1720_s4 + $0xa8] sm:$0xff] }
  0x54   :  { %813 = vmatpush.msra.mxu3 %v427_v11 }
  0x56   :  { %814 = vmatpush.msra.mxu3 %v426_v12 }
  0x58   :  { %815 = vmatpush.msra.mxu3 %v425_v13  ;;  %v1260_v13 = vld [vmem:[%s1720_s4 + $0xa0] sm:$0xff] }
  0x5a   :  { %816 = vmatpush.msra.mxu3 %v424_v15 }
  0x5c   :  { %817 = vmatpush.msra.mxu3 %v423_v17  ;;  %v1251_v17 = vld [vmem:[%s1720_s4 + $0x58] sm:$0xff] }
  0x5e   :  { %818 = vmatpush.msra.mxu3 %v422_v20  ;;  %v1243_v20 = vld [vmem:[%s1720_s4 + $0x18] sm:$0xff] }
  0x60   :  { %819 = vmatpush.msra.mxu3 %v421_v21 }
  0x9f   :  { %v368_v5 = vpop.f32.mrf.mxu1 }
  0xa4   :  { %v349_v9 = vpop.f32.mrf.mxu3 }
  0xa5   :  { %v369_v25 = vadd.f32 %v368_v5, %v349_v9  ;;  %v1262_v5 = vld [vmem:[%s1720_s4 + $0xb0] sm:$0xff]  ;;  %v1245_v9 = vld [vmem:[%s1720_s4 + $0x28] sm:$0xff] }
  0xa6   :  { %v387_v10 = vpop.f32.mrf.mxu2  ;;  %763 = vmatpush.bf16.msrb.mxu2 %v1262_v5  ;;  %726 = vmatpush.bf16.msra.mxu0 %v1245_v9 }
  0xa7   :  { %v370_v14 = vpop.f32.mrf.mxu1  ;;  %v1526_v29 = vadd.f32 %v387_v10, %v369_v25  ;;  %v1252_v10 = vld [vmem:[%s1720_s4 + $0x60] sm:$0xff]  ;;  %v1242_v25 = vld [vmem:[%s1720_s4 + $0x10] sm:$0xff] }
  0xa8   :  { %746 = vmatpush.bf16.msrb.mxu1 %v1252_v10 }
  0xa9   :  { %v406_v34 = vmul.f32 %v1526_v29, %v1526_v29 }
  0xaa   :  { %764 = vmatpush.bf16.msrb.mxu2 %v1261_v8 }
  0xac   :  { %v351_v18 = vpop.f32.mrf.mxu3  ;;  %747 = vmatpush.bf16.msrb.mxu1 %v1251_v17 }
  0xad   :  { %v371_v23 = vadd.f32 %v370_v14, %v351_v18  ;;  %v1244_v14 = vld [vmem:[%s1720_s4 + $0x20] sm:$0xff] }
  0xae   :  { %v389_v19 = vpop.f32.mrf.mxu2  ;;  %765 = vmatpush.bf16.msrb.mxu2 %v1260_v13  ;;  %727 = vmatpush.bf16.msra.mxu0 %v1244_v14 }
  0xaf   :  { %v373_v22 = vpop.f32.mrf.mxu1  ;;  %v1524_v28 = vadd.f32 %v389_v19, %v371_v23  ;;  %v1259_v19 = vld [vmem:[%s1720_s4 + $0x98] sm:$0xff] }
  0xb1   :  { %v407_v31 = vmul.f32 %v1524_v28, %v1524_v28  ;;  %v397_v35 = vadd.f32 %v1524_v28, %v1526_v29 }
  0xb2   :  { %766 = vmatpush.bf16.msrb.mxu2 %v1259_v19  ;;  %728 = vmatpush.bf16.msra.mxu0 %v1243_v20 }
  0xb3   :  { %v410_v39 = vadd.f32 %v407_v31, %v406_v34  ;;  %v1241_v31 = vld [vmem:[%s1720_s4 + $0x8] sm:$0xff]  ;;  %v1240_v34 = vld [vmem:[%s1720_s4] sm:$0xff] }
  0xb4   :  { %v354_v24 = vpop.f32.mrf.mxu3 }
  0xb5   :  { %v374_v26 = vadd.f32 %v373_v22, %v354_v24  ;;  %v1250_v22 = vld [vmem:[%s1720_s4 + $0x50] sm:$0xff] }
  0xb6   :  { %v392_v27 = vpop.f32.mrf.mxu2  ;;  %748 = vmatpush.bf16.msrb.mxu1 %v1250_v22  ;;  %v1258_v24 = vld [vmem:[%s1720_s4 + $0x90] sm:$0xff]  ;;  %729 = vmatpush.bf16.msra.mxu0 %v1242_v25 }
  0xb7   :  { %v1528_v30 = vadd.f32 %v392_v27, %v374_v26  ;;  %v375_v32 = vpop.f32.mrf.mxu1  ;;  %v1249_v26 = vld [vmem:[%s1720_s4 + $0x48] sm:$0xff]  ;;  %767 = vmatpush.bf16.msrb.mxu2 %v1258_v24  ;;  %v1271_v24 = vld [vmem:[%s1723_s8 + $0x38] sm:$0xff] }
  0xb8   :  { %v1257_v27 = vld [vmem:[%s1720_s4 + $0x88] sm:$0xff] }
  0xb9   :  { %v408_v36 = vmul.f32 %v1528_v30, %v1528_v30  ;;  %v398_v40 = vadd.f32 %v397_v35, %v1528_v30 }
  0xba   :  { %749 = vmatpush.bf16.msrb.mxu1 %v1249_v26  ;;  %730 = vmatpush.bf16.msra.mxu0 %v1241_v31  ;;  %v1268_v31 = vld [vmem:[%s1723_s8 + $0x20] sm:$0xff] }
  0xbb   :  { %v411_v42 = vadd.f32 %v410_v39, %v408_v36  ;;  %768 = vmatpush.bf16.msrb.mxu2 %v1257_v27  ;;  %v1270_v27 = vld [vmem:[%s1723_s8 + $0x30] sm:$0xff] }
  0xbc   :  { %v356_v33 = vpop.f32.mrf.mxu3 }
  0xbd   :  { %v376_v37 = vadd.f32 %v375_v32, %v356_v33  ;;  %v1248_v32 = vld [vmem:[%s1720_s4 + $0x40] sm:$0xff] }
  0xbe   :  { %v394_v38 = vpop.f32.mrf.mxu2  ;;  %v1256_v33 = vld [vmem:[%s1720_s4 + $0x80] sm:$0xff]  ;;  %750 = vmatpush.bf16.msrb.mxu1 %v1248_v32  ;;  %731 = vmatpush.bf16.msra.mxu0 %v1240_v34  ;;  %v1267_v34 = vld [vmem:[%s1723_s8 + $0x18] sm:$0xff] }
  0xbf   :  { %v1539_v41 = vadd.f32 %v394_v38, %v376_v37  ;;  %769 = vmatpush.bf16.msrb.mxu2 %v1256_v33 }
  0xc1   :  { %v399_v43 = vadd.f32 %v398_v40, %v1539_v41  ;;  %v409_v46 = vmul.f32 %v1539_v41, %v1539_v41 }
  0xc2   :  { %933 = vmatpush.bf16.msrb.mxu0 %v1271_v24 }
  0xc3   :  { %v400_v48 = vrot.slane %v399_v43, 4  ;;  %v412_v49 = vadd.f32 %v411_v42, %v409_v46 }
  0xc5   :  { %v401_v50 = vadd.f32 %v400_v48, %v399_v43  ;;  %v413_v51 = vrot.slane %v412_v49, 4  ;;  %v463_v43 = vld [vmem:[%s1721_s2] sm:$0x1] }
  0xc6   :  { %934 = vmatpush.bf16.msrb.mxu0 %v1270_v27  ;;  %v848_v27 = vld [vmem:[%s1726_s6] sm:$0x1] }
  0xc7   :  { %v402_v52 = vrot.slane %v401_v50, 2  ;;  %v414_v53 = vadd.f32 %v413_v51, %v412_v49  ;;  %v481_v49 = vld [vmem:[%s1722_s3] sm:$0x1] }
  0xc9   :  { %v403_v54 = vadd.f32 %v402_v52, %v401_v50  ;;  %v415_v55 = vrot.slane %v414_v53, 2 }
  0xca   :  { %935 = vmatpush.bf16.msrb.mxu0 %v1269_v60 }
  0xcb   :  { %v404_v56 = vrot.slane %v403_v54, 1  ;;  %v416_v57 = vadd.f32 %v415_v55, %v414_v53 }
  0xcd   :  { %v417_v58 = vrot.slane %v416_v57, 1  ;;  %v405_v61 = vadd.f32 %v404_v56, %v403_v54 }
  0xce   :  { %936 = vmatpush.bf16.msrb.mxu0 %v1268_v31  ;;  %v1273_v31 = vld [vmem:[%s1724_s9] ss:$0 sm:$0xff] }
  0xcf   :  { %v418_v63 = vadd.f32 %v417_v58, %v416_v57 }
  0xd1   :  { %v420_v0 = vsel %vm419_vm11, %v405_v61, %v418_v63 }
  0xd2   :  { %453 = vmatmul.f32.vlgmr.msrb.gmra.mxu3 %v420_v0  ;;  %937 = vmatpush.bf16.msrb.mxu0 %v1267_v34 }
 0x155   :  { %v454_v11 = vpop.f32.mrf.mxu3 }
 0x156   :  { %v457_v12 = vmul.f32 %v454_v11, %v454_v11 }
 0x158   :  { %v459_v15 = vrot.slane %v457_v12, 7 }
 0x15a   :  { %v461_v18 = vsub.f32 %v454_v11, %v459_v15 }
 0x15c   :  { %v462_v21 = vmax.f32 %v461_v18, 0.0 }
 0x15e   :  { %v464_v23 = vadd.f32 1e-05, %v462_v21 }
 0x160   :  { %1274 = vrsqrt.f32 %v464_v23  ;;  %vm471_vm13 = vweird.f32 %v464_v23 }
 0x166   :  { %v1275_v35 = vpop.eup %1274 }
 0x167   :  { %v466_v36 = vmul.f32 %v1275_v35, %v464_v23  ;;  %vm472_vm12 = vweird.f32 %v1275_v35 }
 0x168   :  { %vm473_vm14 = vmor %vm471_vm13, %vm472_vm12 }
 0x169   :  { %v467_v37 = vmul.f32 %v1275_v35, %v466_v36 }
 0x16b   :  { %v468_v38 = vmul.f32 0.5, %v467_v37 }
 0x16d   :  { %v469_v39 = vsub.f32 1.5, %v468_v38 }
 0x16f   :  { %v470_v40 = vmul.f32 %v1275_v35, %v469_v39 }
 0x171   :  { %v474_v42 = vsel %vm473_vm14, %v1275_v35, %v470_v40  ;;  %v1266_v40 = vld [vmem:[%s1723_s8 + $0x10] sm:$0xff] }
 0x172   :  { %476 = vst [vmem:[#allocation1] sm:$0xff] %v474_v42  ;;  %938 = vmatpush.bf16.msrb.mxu0 %v1266_v40 }
 0x179   :  { %v478_v46 = vld [vmem:[#allocation1 + $0x1] ss:$9 sm:$0xff] }
 0x17a   :  { %v480_v48 = vmul.f32 %v478_v46, %v463_v43 }
 0x17c   :  { %v482_v50 = vmul.f32 %v480_v48, %v454_v11  ;;  %v485_v51 = vperm.slane %v480_v48, 0 }
 0x17e   :  { %v483_v52 = vsub.f32 %v481_v49, %v482_v50  ;;  %v489_v53 = vmul.f32 %v485_v51, %v1528_v30  ;;  %v490_v54 = vmul.f32 %v485_v51, %v1539_v41  ;;  %v487_v56 = vmul.f32 %v485_v51, %v1526_v29  ;;  %v1265_v49 = vld [vmem:[%s1723_s8 + $0x8] sm:$0xff] }
 0x17f   :  { %v488_v57 = vmul.f32 %v485_v51, %v1524_v28  ;;  %939 = vmatpush.bf16.msrb.mxu0 %v1265_v49 }
 0x180   :  { %v492_v55 = vperm.slane %v483_v52, 0 }
 0x182   :  { %v496_v58 = vadd.f32 %v492_v55, %v489_v53  ;;  %v497_v61 = vadd.f32 %v492_v55, %v490_v54  ;;  %v494_v63 = vadd.f32 %v492_v55, %v487_v56  ;;  %v495_v0 = vadd.f32 %v492_v55, %v488_v57 }
 0x184   :  { %v500_v1 = vmax.f32 %v496_v58, 0.0  ;;  %v498_v2 = vmax.f32 %v494_v63, 0.0  ;;  %v499_v3 = vmax.f32 %v495_v0, 0.0  ;;  %v501_v4 = vmax.f32 %v497_v61, 0.0  ;;  %v1264_v61 = vld [vmem:[%s1723_s8] sm:$0xff] }
 0x185   :  { %940 = vmatpush.bf16.msrb.mxu0 %v1264_v61 }
 0x186   :  { %v527_v5 = vpack.c.bf16 %v499_v3, %v498_v2  ;;  %v502_v6 = vrot.slane %v498_v2, 7  ;;  %v503_v7 = vrot.slane %v499_v3, 7  ;;  %v505_v8 = vrot.slane %v501_v4, 7 }
 0x187   :  { %v514_v30 = vrot.slane %v498_v2, 1  ;;  %v515_v9 = vrot.slane %v499_v3, 1  ;;  %v516_v41 = vrot.slane %v500_v1, 1  ;;  %v504_v14 = vrot.slane %v500_v1, 7 }
 0x188   :  { %751 = vmatmul.bf16.vlgmr.msrb.gmra.mxu1 %v527_v5  ;;  %v508_v29 = vsel %vm104_vm0, %v502_v6, %v503_v7  ;;  %v509_v28 = vsel %vm104_vm0, %v505_v8, %v502_v6  ;;  %v517_v15 = vrot.slane %v501_v4, 1  ;;  %v530_v17 = vpack.c.bf16 %v501_v4, %v500_v1 }
 0x189   :  { %v1173_v10 = vpack.c.bf16 %v508_v29, %v509_v28  ;;  %v519_v11 = vsel %vm125_vm1, %v515_v9, %v516_v41  ;;  %v520_v12 = vsel %vm125_vm1, %v514_v30, %v515_v9  ;;  %v506_v18 = vsel %vm104_vm0, %v504_v14, %v505_v8 }
 0x18a   :  { %v1179_v13 = vpack.c.bf16 %v519_v11, %v520_v12  ;;  %v507_v19 = vsel %vm104_vm0, %v503_v7, %v504_v14  ;;  %v518_v20 = vsel %vm125_vm1, %v516_v41, %v517_v15  ;;  %v521_v21 = vsel %vm125_vm1, %v517_v15, %v514_v30 }
 0x18b   :  { %1174 = vmatmul.msk.bf16.vlgmr.msra.gmra.mxu0 %vm1435_vm5, %v1173_v10  ;;  %v1176_v45 = vpack.c.bf16 %v506_v18, %v507_v19  ;;  %v1182_v22 = vpack.c.bf16 %v521_v21, %v518_v20 }
 0x18c   :  { %1180 = vmatmul.msk.bf16.vlgmr.msrb.gmra.mxu2 %vm1440_vm6, %v1179_v13 }
 0x198   :  { %756 = vmatmul.bf16.gmra.mxu1 %v530_v17 }
 0x19b   :  { %1177 = vmatmul.msk.bf16.gmra.mxu0 %vm1462_vm9, %v1176_v45 }
 0x19c   :  { %1183 = vmatmul.msk.bf16.gmra.mxu2 %vm1467_vm10, %v1182_v22 }
 0x1ab   :  { %941 = vmatmul.bf16.vlgmr.msrb.gmra.mxu0 %v1432_v44 }
 0x1bb   :  { %946 = vmatmul.bf16.gmra.mxu0 %v1459_v59 }
 0x205   :  { %v752_v47 = vpop.f32.mrf.mxu1 }
 0x208   :  { %v733_v23 = vpop.f32.mrf.mxu0 }
 0x209   :  { %v753_v37 = vadd.f32 %v752_v47, %v733_v23 }
 0x20d   :  { %v754_v16 = vpop.f32.mrf.mxu1 }
 0x20f   :  { %v771_v25 = vpop.f32.mrf.mxu2 }
 0x210   :  { %v735_v26 = vpop.f32.mrf.mxu0  ;;  %v1671_v42 = vadd.f32 %v771_v25, %v753_v37  ;;  %v830_v25 = vld [vmem:[%s1725_s5] sm:$0x1] }
 0x211   :  { %v755_v35 = vadd.f32 %v754_v16, %v735_v26 }
 0x212   :  { %v790_v51 = vmul.f32 %v1671_v42, %v1671_v42 }
 0x215   :  { %v757_v33 = vpop.f32.mrf.mxu1 }
 0x217   :  { %v773_v62 = vpop.f32.mrf.mxu2 }
 0x218   :  { %v738_v32 = vpop.f32.mrf.mxu0  ;;  %v1666_v38 = vadd.f32 %v773_v62, %v755_v35 }
 0x219   :  { %v758_v39 = vadd.f32 %v757_v33, %v738_v32 }
 0x21a   :  { %v791_v48 = vmul.f32 %v1666_v38, %v1666_v38  ;;  %v781_v52 = vadd.f32 %v1666_v38, %v1671_v42 }
 0x21c   :  { %v794_v56 = vadd.f32 %v791_v48, %v790_v51 }
 0x21d   :  { %v759_v50 = vpop.f32.mrf.mxu1 }
 0x21f   :  { %v776_v36 = vpop.f32.mrf.mxu2 }
 0x220   :  { %v1673_v43 = vadd.f32 %v776_v36, %v758_v39  ;;  %v740_v46 = vpop.f32.mrf.mxu0 }
 0x221   :  { %v760_v54 = vadd.f32 %v759_v50, %v740_v46 }
 0x222   :  { %v792_v53 = vmul.f32 %v1673_v43, %v1673_v43  ;;  %v782_v57 = vadd.f32 %v781_v52, %v1673_v43 }
 0x224   :  { %v795_v63 = vadd.f32 %v794_v56, %v792_v53 }
 0x227   :  { %v778_v55 = vpop.f32.mrf.mxu2 }
 0x228   :  { %v779_v58 = vadd.f32 %v778_v55, %v760_v54  ;;  %v942_v18 = vpop.f32.mrf.mxu0 }
 0x229   :  { %v943_v40 = vadd.f32 %v1273_v31, %v942_v18 }
 0x22a   :  { %v783_v0 = vadd.f32 %v782_v57, %v779_v58  ;;  %v793_v1 = vmul.f32 %v779_v58, %v779_v58 }
 0x22c   :  { %v784_v2 = vrot.slane %v783_v0, 4  ;;  %v796_v3 = vadd.f32 %v795_v63, %v793_v1 }
 0x22e   :  { %v785_v4 = vadd.f32 %v784_v2, %v783_v0  ;;  %v797_v5 = vrot.slane %v796_v3, 4 }
 0x230   :  { %v786_v6 = vrot.slane %v785_v4, 2  ;;  %v798_v7 = vadd.f32 %v797_v5, %v796_v3  ;;  %v944_v45 = vpop.f32.mrf.mxu0 }
 0x231   :  { %v945_v46 = vadd.f32 %v1273_v31, %v944_v45 }
 0x232   :  { %v787_v8 = vadd.f32 %v786_v6, %v785_v4  ;;  %v799_v30 = vrot.slane %v798_v7, 2 }
 0x234   :  { %v788_v9 = vrot.slane %v787_v8, 1  ;;  %v800_v41 = vadd.f32 %v799_v30, %v798_v7 }
 0x236   :  { %v801_v29 = vrot.slane %v800_v41, 1  ;;  %v789_v28 = vadd.f32 %v788_v9, %v787_v8 }
 0x238   :  { %v802_v10 = vadd.f32 %v801_v29, %v800_v41  ;;  %v947_v59 = vpop.f32.mrf.mxu0 }
 0x239   :  { %v948_v48 = vadd.f32 %v1273_v31, %v947_v59 }
 0x23a   :  { %v803_v11 = vsel %vm419_vm11, %v789_v28, %v802_v10 }
 0x23b   :  { %820 = vmatmul.f32.vlgmr.msra.gmra.mxu3 %v803_v11 }
 0x240   :  { %v949_v33 = vpop.f32.mrf.mxu0 }
 0x241   :  { %v950_v49 = vadd.f32 %v1273_v31, %v949_v33 }
 0x2be   :  { %v821_v12 = vpop.f32.mrf.mxu3 }
 0x2bf   :  { %v824_v13 = vmul.f32 %v821_v12, %v821_v12 }
 0x2c1   :  { %v826_v14 = vrot.slane %v824_v13, 7 }
 0x2c3   :  { %v828_v15 = vsub.f32 %v821_v12, %v826_v14 }
 0x2c5   :  { %v829_v17 = vmax.f32 %v828_v15, 0.0 }
 0x2c7   :  { %v831_v44 = vadd.f32 1e-05, %v829_v17 }
 0x2c9   :  { %1276 = vrsqrt.f32 %v831_v44  ;;  %vm838_vm0 = vweird.f32 %v831_v44 }
 0x2cf   :  { %v1277_v19 = vpop.eup %1276 }
 0x2d0   :  { %v833_v20 = vmul.f32 %v1277_v19, %v831_v44  ;;  %vm839_vm15 = vweird.f32 %v1277_v19 }
 0x2d1   :  { %vm840_vm1 = vmor %vm838_vm0, %vm839_vm15 }
 0x2d2   :  { %v834_v21 = vmul.f32 %v1277_v19, %v833_v20 }
 0x2d4   :  { %v835_v22 = vmul.f32 0.5, %v834_v21 }
 0x2d6   :  { %v836_v47 = vsub.f32 1.5, %v835_v22 }
 0x2d8   :  { %v837_v23 = vmul.f32 %v1277_v19, %v836_v47 }
 0x2da   :  { %v841_v24 = vsel %vm840_vm1, %v1277_v19, %v837_v23 }
 0x2db   :  { %843 = vst [vmem:[#allocation1] sm:$0xff] %v841_v24 }
 0x2e2   :  { %v845_v26 = vld [vmem:[#allocation1 + $0x1] ss:$9 sm:$0xff] }
 0x2e3   :  { %v847_v16 = vmul.f32 %v845_v26, %v830_v25 }
 0x2e5   :  { %v849_v60 = vmul.f32 %v847_v16, %v821_v12  ;;  %v852_v62 = vperm.slane %v847_v16, 0 }
 0x2e7   :  { %v850_v32 = vsub.f32 %v848_v27, %v849_v60  ;;  %v854_v34 = vmul.f32 %v852_v62, %v1671_v42  ;;  %v855_v36 = vmul.f32 %v852_v62, %v1666_v38  ;;  %v856_v37 = vmul.f32 %v852_v62, %v1673_v43 }
 0x2e8   :  { %v857_v39 = vmul.f32 %v852_v62, %v779_v58 }
 0x2e9   :  { %v859_v35 = vperm.slane %v850_v32, 0 }
 0x2eb   :  { %v861_v50 = vadd.f32 %v859_v35, %v854_v34  ;;  %v862_v51 = vadd.f32 %v859_v35, %v855_v36  ;;  %v863_v52 = vadd.f32 %v859_v35, %v856_v37  ;;  %v864_v53 = vadd.f32 %v859_v35, %v857_v39 }
 0x2ed   :  { %v952_v54 = vadd.f32 %v943_v40, %v861_v50  ;;  %v953_v55 = vadd.f32 %v945_v46, %v862_v51  ;;  %v954_v56 = vadd.f32 %v948_v48, %v863_v52  ;;  %v955_v57 = vadd.f32 %v950_v49, %v864_v53 }
 0x2ef   :  { %v956_v61 = vmax.f32 %v952_v54, 0.0  ;;  %v957_v42 = vmax.f32 %v953_v55, 0.0  ;;  %v958_v63 = vmax.f32 %v954_v56, 0.0  ;;  %v959_v0 = vmax.f32 %v955_v57, 0.0 }
 0x2f1   :  { %960 = vst [vmem:[%s1727_s10] sm:$0xff] %v956_v61 }
 0x2f2   :  { %961 = vst [vmem:[%s1727_s10 + $0x8] sm:$0xff] %v957_v42 }
 0x2f3   :  { %962 = vst [vmem:[%s1727_s10 + $0x10] sm:$0xff] %v958_v63 }
 0x2f4   :  { %963 = vst [vmem:[%s1727_s10 + $0x18] sm:$0xff] %v959_v0 }

</bundles_post_ra>
